<compile_context>
chip_gen: v5e
topology: v5e:2x2
jax: 0.10.0
libtpu: 0.0.40
codegen_flags: <defaults>
</compile_context>

<pallas_src>
import jax
import jax.numpy as jnp
from jax import lax
from jax.experimental import pallas as pl
from jax.experimental.pallas import tpu as pltpu


def _embed_block_kernel(ids_ref, table_ref, out_ref):
    # ids_ref:   VMEM (TOK_BLOCK, 1) int32  token ids for this block
    # table_ref: VMEM (V, E)               embedding table (resident: constant
    #                                      index_map -> fetched once, reused)
    # out_ref:   VMEM (TOK_BLOCK, E)
    tok_block = ids_ref.shape[0]
    v = table_ref.shape[0]

    ids = ids_ref[...]                                                # (TOK_BLOCK, 1)
    vocab_iota = lax.broadcasted_iota(jnp.int32, (tok_block, v), 1)   # (TOK_BLOCK, V)
    one_hot = (ids == vocab_iota).astype(table_ref.dtype)             # (TOK_BLOCK, V)

    # Gather as a one-hot matmul on the MXU: exactly one 1.0 per row -> exact.
    out_ref[...] = jnp.dot(
        one_hot, table_ref[...], preferred_element_type=jnp.float32
    ).astype(out_ref.dtype)


def bigram_embedding(idx, table, *, tok_block=512):
    """Pallas equivalent of BigramModel.forward: nn.Embedding lookup.

    idx:   (B, T) integer token ids
    table: (V, E) float32 embedding weight
    returns (B, T, E) float32
    """
    B, T = idx.shape
    V, E = table.shape
    N = B * T

    # Token-block size: multiple of 8 (sublane-dense), capped by the (rounded
    # up) number of tokens so tiny inputs don't over-pad.
    tok_block = min(tok_block, max(8, ((N + 7) // 8) * 8))
    tok_block = max(8, (tok_block // 8) * 8)
    n_blocks = pl.cdiv(N, tok_block)
    n_pad = n_blocks * tok_block

    # Flatten + clamp ids (PyTorch would raise on out-of-range; we remap).
    flat_ids = jnp.clip(idx.reshape(N).astype(jnp.int32), 0, V - 1)
    if n_pad != N:
        flat_ids = jnp.pad(flat_ids, (0, n_pad - N))  # pad with id 0 (valid row)
    ids2d = flat_ids.reshape(n_pad, 1)

    out = pl.pallas_call(
        _embed_block_kernel,
        out_shape=jax.ShapeDtypeStruct((n_pad, E), table.dtype),
        grid_spec=pltpu.PrefetchScalarGridSpec(
            num_scalar_prefetch=0,
            grid=(n_blocks,),
            in_specs=[
                # Per-step block of token ids (last block dim == full dim 1).
                pl.BlockSpec((tok_block, 1), lambda i: (i, 0)),
                # Full table, constant block index -> DMA'd once, resident.
                pl.BlockSpec((V, E), lambda i: (0, 0)),
            ],
            # Sublane-dense output block; last dim equals the full array dim,
            # so no padded lanes to slice off after the call.
            out_specs=pl.BlockSpec((tok_block, E), lambda i: (i, 0)),
        ),
        compiler_params=pltpu.CompilerParams(
            dimension_semantics=("parallel",)),
    )(ids2d, table)

    if n_pad != N:
        out = out[:N]
    return out.reshape(B, T, E)


# TODO(synk): BigramModel.generate uses torch.multinomial sampling; the
# autoregressive sampling loop is left to plain JAX (jax.random.categorical)
# outside the kernel.


if __name__ == "__main__":
    embedding_size = 100          # matches the module default (V == E == 100)
    B, T = 2, 8

    key = jax.random.PRNGKey(0)
    k_table, k_idx = jax.random.split(key)

    # Deterministic parameter init (nn.Embedding weight ~ N(0, 1)).
    table = jax.random.normal(k_table, (embedding_size, embedding_size),
                              dtype=jnp.float32)
    idx = jax.random.randint(k_idx, (B, T), 0, embedding_size, dtype=jnp.int32)

    out = bigram_embedding(idx, table)
    out = jax.block_until_ready(out)

    # Reference check: plain gather (one-hot matmul is exact for f32 table).
    ref = table[idx]
    assert out.shape == (B, T, embedding_size)
    assert jnp.allclose(out, ref, atol=1e-6), "mismatch vs reference gather"

    print("KERNEL_OK")
</pallas_src>

<mosaic_0001>
module attributes {stable_mosaic.version = 11 : i64} {
  func.func @_embed_block_kernel(%arg0: i32, %arg1: memref<16x1xi32, #tpu.memory_space<vmem>>, %arg2: memref<100x100xf32, #tpu.memory_space<vmem>>, %arg3: memref<16x100xf32, #tpu.memory_space<vmem>>) attributes {dimension_semantics = [#tpu.dimension_semantics<parallel>], iteration_bounds = array<i64: 1>, scalar_prefetch = 0 : i64, scratch_operands = 0 : i64, tpu.core_type = #tpu.core_type<tc>, window_params = [{transform_indices = @transform_0, window_bounds = array<i64: 16, 1>}, {pipeline_mode = #tpu.pipeline_mode<synchronous>, transform_indices = @transform_1, window_bounds = array<i64: 100, 100>}, {transform_indices = @transform_2, window_bounds = array<i64: 16, 100>}]} {
    %c0 = arith.constant 0 : index
    %c0_0 = arith.constant 0 : index
    %0 = vector.load %arg1[%c0, %c0_0] : memref<16x1xi32, #tpu.memory_space<vmem>>, vector<16x1xi32>
    %1 = tpu.iota {dimensions = array<i32: 1>} : vector<16x100xi32>
    %2 = vector.broadcast %0 : vector<16x1xi32> to vector<16x100xi32>
    %3 = arith.cmpi eq, %2, %1 : vector<16x100xi32>
    %4 = arith.extui %3 : vector<16x100xi1> to vector<16x100xi32>
    %5 = arith.sitofp %4 : vector<16x100xi32> to vector<16x100xf32>
    %c0_1 = arith.constant 0 : index
    %c0_2 = arith.constant 0 : index
    %6 = vector.load %arg2[%c0_1, %c0_2] : memref<100x100xf32, #tpu.memory_space<vmem>>, vector<100x100xf32>
    %cst = arith.constant dense<0.000000e+00> : vector<16x100xf32>
    %7 = tpu.matmul %5, %6, %cst {dimension_numbers = #tpu.dot_dimension_numbers<[1], [0], [0], [1], [0, 0, 1, 1], [], []>} : vector<16x100xf32>, vector<100x100xf32>, vector<16x100xf32> -> vector<16x100xf32>
    %c0_3 = arith.constant 0 : index
    %c0_4 = arith.constant 0 : index
    %8 = vector.load %arg3[%c0_3, %c0_4] : memref<16x100xf32, #tpu.memory_space<vmem>>, vector<16x100xf32>
    tpu.vector_store %arg3[%c0_3, %c0_4], %7 {strides = array<i32>} : memref<16x100xf32, #tpu.memory_space<vmem>>, vector<16x100xf32>,
    return
  }
  func.func @transform_0(%arg0: i32) -> (i32, i32) {
    %c0_i32 = arith.constant 0 : i32
    %c0_i32_0 = arith.constant 0 : i32
    return %arg0, %c0_i32 : i32, i32
  }
  func.func @transform_1(%arg0: i32) -> (i32, i32) {
    %c0_i32 = arith.constant 0 : i32
    %c0_i32_0 = arith.constant 0 : i32
    %c0_i32_1 = arith.constant 0 : i32
    return %c0_i32, %c0_i32_0 : i32, i32
  }
  func.func @transform_2(%arg0: i32) -> (i32, i32) {
    %c0_i32 = arith.constant 0 : i32
    %c0_i32_0 = arith.constant 0 : i32
    return %arg0, %c0_i32 : i32, i32
  }
}

</mosaic_0001>

<bundles_post_ra>
// kernel: tpu_custom_call.1
= control target key start
LH: loop header
LB: loop body
LE: loop exit
PB: predicated region body
PF: predicated region fallthrough
CT: control target
= control target key end

     0   :  { %7 = vsyncpa [#allocation3], 0  ;;  %s232_s0 = inlined_call_operand.vmem [shape: s32[16,1], index: 0, kind: input, shape index: {}]   ;;  %s233_s1 = inlined_call_operand.hbm [shape: f32[100,100], index: 1, kind: input, shape index: {}]   ;;  %s234_s2 = inlined_call_operand.hbm [shape: f32[16,100], index: 2, kind: output, shape index: {}]  }
   0x1   :  { %8 = vsyncpa [#allocation4], 0  ;;  %s15_s11 = sshll.u32 %s233_s1, 4  ;;  %s189_s12 = smov [#allocation2]   ;;  %s16_s11 = int_to_ptr.hbm [resolvable:$true] %s15_s11 }
   0x2   :  { %s17_s13 = sshll.u32 %s189_s12, 4  ;;  %s190_s14 = smov 128   ;;  %s18_s13 = int_to_ptr.vmem [resolvable:$true] %s17_s13 }
   0x3   :  { %s191_s15 = smov 8  }
   0x4   :  { %23 = dma.hbm_to_vmem [thread:$0]  %s16_s11, 1664, %s18_s13, [#allocation3], %s190_s14, %s190_s14, %s191_s15  }
   0x5   :  { %185 = dma.done.wait [#allocation3], 1664  }
   0x6   :  { %186 = vsyncadd [#allocation3], 4294965632  ;;  %v192_v0 = vmov 0   ;;  %vm64_vm0 = vcmask 1043456   ;;  %v28_v1 = vld [vmem:[%s232_s0] sm:$0xff]  ;;  %v55_v3 = vld [vmem:[#allocation2 + $0x58] sm:$0xff]  ;;  %v30_v16 = vlaneseq }
   0x7   :  { %136 = vset.pattern.permute.xlu0 %v192_v0  ;;  %v56_v2 = vld [vmem:[#allocation2 + $0x60] sm:$0xf]  ;;  %v54_v4 = vld [vmem:[#allocation2 + $0x50] sm:$0xff]  ;;  %v53_v5 = vld [vmem:[#allocation2 + $0x48] sm:$0xff]  ;;  %vm57_vm1 = vcmask 818176   ;;  %v193_v19 = vmov 0.0  }
   0x8   :  { %33 = vperm.xlu0 %136, %v28_v1   ;;  %114 = vmatpush.msk.msra.mxu0 %vm64_vm0, %v56_v2  ;;  %v29_v6 = vld [vmem:[%s232_s0 + $0x8] sm:$0xff]  ;;  %v52_v7 = vld [vmem:[#allocation2 + $0x40] sm:$0xff]  ;;  %v51_v8 = vld [vmem:[#allocation2 + $0x38] sm:$0xff]  ;;  %v31_v17 = vand.u32 127, %v30_v16  ;;  %s194_s0 = smov [#allocation5]   ;;  %s99_s22 = sshll.u32 %s234_s2, 4  ;;  %s100_s22 = int_to_ptr.hbm [resolvable:$true] %s99_s22 }
   0x9   :  { %117 = vmatpush.msk.msra.mxu1 %vm64_vm0, %v56_v2  ;;  %v50_v9 = vld [vmem:[#allocation2 + $0x30] sm:$0xff]  ;;  %v49_v10 = vld [vmem:[#allocation2 + $0x28] sm:$0xff]  ;;  %v48_v11 = vld [vmem:[#allocation2 + $0x20] sm:$0xff]  ;;  %s97_s19 = sshll.u32 %s194_s0, 4  ;;  %s98_s19 = int_to_ptr.vmem [resolvable:$true] %s97_s19 }
   0xa   :  { %72 = vmatpush.msra.mxu0 %v55_v3  ;;  %v47_v12 = vld [vmem:[#allocation2 + $0x18] sm:$0xff]  ;;  %v46_v13 = vld [vmem:[#allocation2 + $0x10] sm:$0xff]  ;;  %v45_v14 = vld [vmem:[#allocation2 + $0x8] sm:$0xff] }
   0xb   :  { %118 = vmatpush.msra.mxu1 %v55_v3  ;;  %v44_v15 = vld [vmem:[#allocation2] sm:$0xff] }
   0xc   :  { %73 = vmatpush.msra.mxu0 %v54_v4 }
   0xd   :  { %119 = vmatpush.msra.mxu1 %v54_v4 }
   0xe   :  { %74 = vmatpush.msra.mxu0 %v53_v5 }
   0xf   :  { %120 = vmatpush.msra.mxu1 %v53_v5 }
  0x10   :  { %36 = vperm.xlu0 %136, %v29_v6   ;;  %75 = vmatpush.msra.mxu0 %v52_v7 }
  0x11   :  { %121 = vmatpush.msra.mxu1 %v52_v7 }
  0x12   :  { %76 = vmatpush.msra.mxu0 %v51_v8 }
  0x13   :  { %122 = vmatpush.msra.mxu1 %v51_v8 }
  0x14   :  { %77 = vmatpush.msra.mxu0 %v50_v9 }
  0x15   :  { %123 = vmatpush.msra.mxu1 %v50_v9 }
  0x16   :  { %78 = vmatpush.msra.mxu0 %v49_v10 }
  0x17   :  { %124 = vmatpush.msra.mxu1 %v49_v10 }
  0x18   :  { %79 = vmatpush.msra.mxu0 %v48_v11 }
  0x19   :  { %125 = vmatpush.msra.mxu1 %v48_v11 }
  0x1a   :  { %80 = vmatpush.msra.mxu0 %v47_v12 }
  0x1b   :  { %126 = vmatpush.msra.mxu1 %v47_v12 }
  0x1c   :  { %81 = vmatpush.msra.mxu0 %v46_v13 }
  0x1d   :  { %127 = vmatpush.msra.mxu1 %v46_v13 }
  0x1e   :  { %82 = vmatpush.msra.mxu0 %v45_v14 }
  0x1f   :  { %128 = vmatpush.msra.mxu1 %v45_v14 }
  0x20   :  { %83 = vmatpush.msra.mxu0 %v44_v15 }
  0x21   :  { %129 = vmatpush.msra.mxu1 %v44_v15 }
  0x7a   :  { %v34_v18 = vpop.permute.xlu0 %33 }
  0x7b   :  { %vm38_vm2 = vcmp.eq.s32.totalorder %v34_v18, %v31_v17 }
  0x7c   :  { %v112_v20 = vsel %vm38_vm2, 1.0, %v193_v19 }
  0x7d   :  { %115 = vmatmul.msk.f32.vlgmr.msra.gmra.mxu0 %vm57_vm1, %v112_v20 }
  0x82   :  { %v37_v21 = vpop.permute.xlu0 %36 }
  0x83   :  { %vm39_vm3 = vcmp.eq.s32.totalorder %v37_v21, %v31_v17 }
  0x84   :  { %v113_v22 = vsel %vm39_vm3, 1.0, %v193_v19 }
  0x85   :  { %116 = vmatmul.msk.f32.vlgmr.msra.gmra.mxu1 %vm57_vm1, %v113_v22 }
  0xfa   :  { %v85_v23 = vpop.f32.mrf.mxu0 }
  0xfb   :  { %91 = vst.msk [vmem:[#allocation5] sm:$0xff] %vm57_vm1, %v85_v23 }
 0x102   :  { %v88_v24 = vpop.f32.mrf.mxu1 }
 0x103   :  { %92 = vst.msk [vmem:[#allocation5 + $0x8] sm:$0xff] %vm57_vm1, %v88_v24 }
 0x104   :  { %105 = dma.vmem_to_hbm [thread:$0]  %s98_s19, 256, %s100_s22, [#allocation4], %s190_s14, %s190_s14, %s191_s15  }
 0x105   :  { %187 = dma.done.wait [#allocation4], 256  }
 0x106   :  { %188 = vsyncadd [#allocation4], 4294967040 }
 0x107   :  { %110 = vsyncpa [#allocation3], 1 }
 0x108   :  { %111 = vsyncpa [#allocation4], 1 }

</bundles_post_ra>
